<compile_context>
chip_gen: v7x
topology: tpu7x:2x2x1
jax: 0.10.0
libtpu: 0.0.40
codegen_flags: <defaults>
</compile_context>

<pallas_src>
import functools

import jax
import jax.numpy as jnp
from jax.experimental import pallas as pl
from jax.experimental.pallas import tpu as pltpu


def _cdiv(a: int, b: int) -> int:
    return (a + b - 1) // b


def _round_up(x: int, m: int) -> int:
    return _cdiv(x, m) * m


def _vmem_capacity_bytes() -> int:
    try:
        return int(pltpu.get_tpu_info().vmem_capacity_bytes)
    except Exception:
        return 64 * 1024 * 1024  # conservative fallback: v7x per-TC VMEM


def _default_tile_caps(use_bf16: bool):
    cap = _vmem_capacity_bytes()
    if cap >= 96 * 1024 * 1024:           # v5e / v6e: 128 MiB physical VMEM
        return (1024, 1024, 2048) if use_bf16 else (768, 768, 1024)
    # v7x: 64 MiB VMEM per TensorCore — keep tiles capped.
    return (768, 768, 1024) if use_bf16 else (512, 512, 1024)


def _linear_relu_kernel_acc_out(x_ref, w_ref, b_ref, o_ref):
    """f32 output: accumulate directly into the resident output block (no scratch)."""
    k = pl.program_id(2)

    @pl.when(k == 0)
    def _init():
        o_ref[...] = jnp.zeros_like(o_ref)

    # MXU partial product, f32 accumulation into the output tile (resident across K).
    o_ref[...] += jnp.dot(x_ref[...], w_ref[...], preferred_element_type=jnp.float32)

    @pl.when(k == pl.num_programs(2) - 1)
    def _epilogue():
        # Bias add + ReLU only once, on the final K step (VPU work, hidden under MXU).
        o_ref[...] = jnp.maximum(o_ref[...] + b_ref[...].astype(jnp.float32), 0.0)


def _linear_relu_kernel_scratch(x_ref, w_ref, b_ref, o_ref, acc_ref):
    """Narrow output dtypes: f32 VMEM accumulator scratch, cast on the last K step."""
    k = pl.program_id(2)

    @pl.when(k == 0)
    def _init():
        acc_ref[...] = jnp.zeros_like(acc_ref)

    acc_ref[...] += jnp.dot(x_ref[...], w_ref[...], preferred_element_type=jnp.float32)

    @pl.when(k == pl.num_programs(2) - 1)
    def _epilogue():
        out = acc_ref[...] + b_ref[...].astype(jnp.float32)
        o_ref[...] = jnp.maximum(out, 0.0).astype(o_ref.dtype)


@functools.partial(
    jax.jit, static_argnames=("use_bf16", "tm_max", "tn_max", "tk_max")
)
def linear_block_forward(x, w_t, b, *, use_bf16=True, tm_max=None, tn_max=None,
                         tk_max=None):
    """ReLU(x @ w_t + b).

    x:   [B, Din]     float32 (cast to bf16 for the MXU when use_bf16=True)
    w_t: [Din, Dout]  float32 (= W.T)
    b:   [Dout]       float32
    """
    M, K = x.shape
    K2, N = w_t.shape
    assert K == K2 and b.shape == (N,)
    out_dtype = x.dtype

    if tm_max is None or tn_max is None or tk_max is None:
        d_tm, d_tn, d_tk = _default_tile_caps(use_bf16)
        tm_max = tm_max or d_tm
        tn_max = tn_max or d_tn
        tk_max = tk_max or d_tk

    m_align = 16 if use_bf16 else 8  # bf16 packs two rows per sublane

    # Balanced tiles: pick the smallest tile that keeps the same block count as the
    # cap would, minimizing padding waste on ragged dims (e.g. M=300 -> tm=304, not 512).
    tm = _round_up(_cdiv(M, _cdiv(M, tm_max)), m_align)
    tn = _round_up(_cdiv(N, _cdiv(N, tn_max)), 128)
    tk = _round_up(_cdiv(K, _cdiv(K, tk_max)), 128)

    Mp, Np, Kp = _round_up(M, tm), _round_up(N, tn), _round_up(K, tk)

    # v7x has 2 TensorCores: make sure a "parallel" grid axis has >=2 blocks when it
    # costs no extra padding. No effect on single-TC v5e/v6e beyond a tiny step overhead.
    if Mp // tm == 1 and Np // tn == 1:
        if tn % 256 == 0:
            tn //= 2
        elif tm % (2 * m_align) == 0:
            tm //= 2
        Mp, Np = _round_up(M, tm), _round_up(N, tn)

    in_dtype = jnp.dtype(jnp.bfloat16) if use_bf16 else jnp.dtype(x.dtype)
    if jnp.dtype(x.dtype) != in_dtype:
        x = x.astype(in_dtype)
    if jnp.dtype(w_t.dtype) != in_dtype:
        w_t = w_t.astype(in_dtype)
    # TODO(synk): in a full model, cast/pad the static weight + bias once at init time
    # instead of on every forward call.

    # Pad only when needed. K zero-padding is load-bearing (garbage K columns would
    # enter the accumulation); M/N padding only touches rows/cols sliced off below.
    if (Mp, Kp) != (M, K):
        x = jnp.pad(x, ((0, Mp - M), (0, Kp - K)))
    if (Kp, Np) != (K, N):
        w_t = jnp.pad(w_t, ((0, Kp - K), (0, Np - N)))
    b2 = b if Np == N else jnp.pad(b, (0, Np - N))
    b2 = b2.reshape(1, Np).astype(jnp.float32)

    grid = (Mp // tm, Np // tn, Kp // tk)
    in_elt = jnp.dtype(in_dtype).itemsize
    out_elt = jnp.dtype(out_dtype).itemsize

    accumulate_in_out = jnp.dtype(out_dtype) == jnp.dtype(jnp.float32)
    kernel = _linear_relu_kernel_acc_out if accumulate_in_out else _linear_relu_kernel_scratch
    scratch = [] if accumulate_in_out else [pltpu.VMEM((tm, tn), jnp.float32)]

    # Double-buffered inputs + output (+ optional scratch), plus headroom.
    vmem_needed = (2 * (tm * tk + tk * tn) * in_elt
                   + 2 * tm * tn * out_elt
                   + 2 * tn * 4
                   + (0 if accumulate_in_out else tm * tn * 4))
    vmem_limit = int(min(48 * 1024 * 1024,
                         max(32 * 1024 * 1024, vmem_needed + (8 << 20))))

    out = pl.pallas_call(
        kernel,
        out_shape=jax.ShapeDtypeStruct((Mp, Np), out_dtype),
        grid=grid,
        in_specs=[
            pl.BlockSpec((tm, tk), lambda i, j, k: (i, k)),   # x tile
            pl.BlockSpec((tk, tn), lambda i, j, k: (k, j)),   # w tile
            pl.BlockSpec((1, tn), lambda i, j, k: (0, j)),    # bias tile
        ],
        out_specs=pl.BlockSpec((tm, tn), lambda i, j, k: (i, j)),
        scratch_shapes=scratch,
        compiler_params=pltpu.CompilerParams(
            dimension_semantics=("parallel", "parallel", "arbitrary"),
            vmem_limit_bytes=vmem_limit,
        ),
        cost_estimate=pl.CostEstimate(
            flops=2 * Mp * Np * Kp,
            transcendentals=0,
            # Reads re-stream: x once per N-block, w once per M-block; one output write.
            bytes_accessed=(in_elt * (grid[1] * Mp * Kp + grid[0] * Kp * Np)
                            + out_elt * Mp * Np + 4 * Np),
        ),
    )(x, w_t, b2)

    if (Mp, Np) != (M, N):
        out = out[:M, :N]
    return out


def _reference_f32(x, W, b):
    return jnp.maximum(x @ W.T + b, 0.0)


if __name__ == "__main__":
    key = jax.random.PRNGKey(0)

    # --- Test 1: small shapes consistent with nn.Linear(input_dim, output_dim) ---
    B, Din, Dout = 8, 32, 32
    k1, k2, k3, key = jax.random.split(key, 4)
    x = jax.random.normal(k1, (B, Din), dtype=jnp.float32)
    bound = 1.0 / (Din ** 0.5)
    W = jax.random.uniform(k2, (Dout, Din), jnp.float32, -bound, bound)
    b = jax.random.uniform(k3, (Dout,), jnp.float32, -bound, bound)

    # Exact f32 path (tight tolerance against the PyTorch-equivalent reference).
    out_f32 = jax.block_until_ready(linear_block_forward(x, W.T, b, use_bf16=False))
    ref = _reference_f32(x, W, b)
    assert out_f32.shape == (B, Dout)
    assert jnp.allclose(out_f32, ref, atol=1e-5, rtol=1e-5), "mismatch (f32 path)"

    # Production default: bf16 MXU operands, f32 accumulation. Compare against a
    # reference computed on bf16-cast operands (same operand precision).
    out_bf16 = jax.block_until_ready(linear_block_forward(x, W.T, b))
    ref_bf16 = _reference_f32(
        x.astype(jnp.bfloat16).astype(jnp.float32),
        W.astype(jnp.bfloat16).astype(jnp.float32), b)
    assert jnp.allclose(out_bf16, ref_bf16, atol=1e-3, rtol=1e-3), "mismatch (bf16 path)"

    # --- Test 2: ragged, multi-tile shapes exercise K-accumulation, balanced-M
    #     tiling, conditional padding, and the gated bias/ReLU epilogue. ---
    B2, Din2, Dout2 = 300, 512, 384
    k1, k2, k3, key = jax.random.split(key, 4)
    x2 = jax.random.normal(k1, (B2, Din2), dtype=jnp.float32)
    bound2 = 1.0 / (Din2 ** 0.5)
    W2 = jax.random.uniform(k2, (Dout2, Din2), jnp.float32, -bound2, bound2)
    b2 = jax.random.uniform(k3, (Dout2,), jnp.float32, -bound2, bound2)

    out2 = jax.block_until_ready(linear_block_forward(x2, W2.T, b2))
    ref2 = _reference_f32(
        x2.astype(jnp.bfloat16).astype(jnp.float32),
        W2.astype(jnp.bfloat16).astype(jnp.float32), b2)
    assert out2.shape == (B2, Dout2)
    assert jnp.allclose(out2, ref2, atol=5e-3, rtol=5e-3), "mismatch (tiled bf16)"

    print("KERNEL_OK")
</pallas_src>

<mosaic_0001>
module attributes {stable_mosaic.version = 11 : i64} {
  func.func @_linear_relu_kernel_acc_out(%arg0: i32, %arg1: i32, %arg2: i32, %arg3: memref<8x128xf32, #tpu.memory_space<vmem>>, %arg4: memref<128x128xf32, #tpu.memory_space<vmem>>, %arg5: memref<1x128xf32, #tpu.memory_space<vmem>>, %arg6: memref<8x128xf32, #tpu.memory_space<vmem>>) attributes {dimension_semantics = [#tpu.dimension_semantics<parallel>, #tpu.dimension_semantics<parallel>, #tpu.dimension_semantics<arbitrary>], iteration_bounds = array<i64: 1, 1, 1>, scalar_prefetch = 0 : i64, scratch_operands = 0 : i64, tpu.core_type = #tpu.core_type<tc>, window_params = [{transform_indices = @transform_0, window_bounds = array<i64: 8, 128>}, {transform_indices = @transform_1, window_bounds = array<i64: 128, 128>}, {transform_indices = @transform_2, window_bounds = array<i64: 1, 128>}, {transform_indices = @transform_3, window_bounds = array<i64: 8, 128>}]} {
    %c0_i32 = arith.constant 0 : i32
    %0 = arith.cmpi eq, %arg2, %c0_i32 : i32
    %1 = arith.extui %0 : i1 to i32
    %c0_i32_0 = arith.constant 0 : i32
    %2 = arith.cmpi ne, %1, %c0_i32_0 : i32
    scf.if %2 {
      %cst_10 = arith.constant 0.000000e+00 : f32
      %12 = vector.broadcast %cst_10 : f32 to vector<8x128xf32>
      %c0_11 = arith.constant 0 : index
      %c0_12 = arith.constant 0 : index
      %13 = vector.load %arg6[%c0_11, %c0_12] : memref<8x128xf32, #tpu.memory_space<vmem>>, vector<8x128xf32>
      tpu.vector_store %arg6[%c0_11, %c0_12], %12 {strides = array<i32>} : memref<8x128xf32, #tpu.memory_space<vmem>>, vector<8x128xf32>,
    } else {
    }
    %c0 = arith.constant 0 : index
    %c0_1 = arith.constant 0 : index
    %3 = vector.load %arg6[%c0, %c0_1] : memref<8x128xf32, #tpu.memory_space<vmem>>, vector<8x128xf32>
    %c0_2 = arith.constant 0 : index
    %c0_3 = arith.constant 0 : index
    %4 = vector.load %arg3[%c0_2, %c0_3] : memref<8x128xf32, #tpu.memory_space<vmem>>, vector<8x128xf32>
    %c0_4 = arith.constant 0 : index
    %c0_5 = arith.constant 0 : index
    %5 = vector.load %arg4[%c0_4, %c0_5] : memref<128x128xf32, #tpu.memory_space<vmem>>, vector<128x128xf32>
    %cst = arith.constant dense<0.000000e+00> : vector<8x128xf32>
    %6 = tpu.matmul %4, %5, %cst {dimension_numbers = #tpu.dot_dimension_numbers<[1], [0], [0], [1], [0, 0, 1, 1], [], []>} : vector<8x128xf32>, vector<128x128xf32>, vector<8x128xf32> -> vector<8x128xf32>
    %7 = arith.addf %3, %6 : vector<8x128xf32>
    %c0_6 = arith.constant 0 : index
    %c0_7 = arith.constant 0 : index
    %8 = vector.load %arg6[%c0_6, %c0_7] : memref<8x128xf32, #tpu.memory_space<vmem>>, vector<8x128xf32>
    tpu.vector_store %arg6[%c0_6, %c0_7], %7 {strides = array<i32>} : memref<8x128xf32, #tpu.memory_space<vmem>>, vector<8x128xf32>,
    %c0_i32_8 = arith.constant 0 : i32
    %9 = arith.cmpi eq, %arg2, %c0_i32_8 : i32
    %10 = arith.extui %9 : i1 to i32
    %c0_i32_9 = arith.constant 0 : i32
    %11 = arith.cmpi ne, %10, %c0_i32_9 : i32
    scf.if %11 {
      %c0_10 = arith.constant 0 : index
      %c0_11 = arith.constant 0 : index
      %12 = vector.load %arg6[%c0_10, %c0_11] : memref<8x128xf32, #tpu.memory_space<vmem>>, vector<8x128xf32>
      %c0_12 = arith.constant 0 : index
      %c0_13 = arith.constant 0 : index
      %13 = vector.load %arg5[%c0_12, %c0_13] : memref<1x128xf32, #tpu.memory_space<vmem>>, vector<1x128xf32>
      %14 = vector.broadcast %13 : vector<1x128xf32> to vector<8x128xf32>
      %15 = arith.addf %12, %14 : vector<8x128xf32>
      %cst_14 = arith.constant 0.000000e+00 : f32
      %16 = vector.broadcast %cst_14 : f32 to vector<8x128xf32>
      %17 = arith.maximumf %15, %16 : vector<8x128xf32>
      %c0_15 = arith.constant 0 : index
      %c0_16 = arith.constant 0 : index
      %18 = vector.load %arg6[%c0_15, %c0_16] : memref<8x128xf32, #tpu.memory_space<vmem>>, vector<8x128xf32>
      tpu.vector_store %arg6[%c0_15, %c0_16], %17 {strides = array<i32>} : memref<8x128xf32, #tpu.memory_space<vmem>>, vector<8x128xf32>,
    } else {
    }
    return
  }
  func.func @transform_0(%arg0: i32, %arg1: i32, %arg2: i32) -> (i32, i32) {
    %c0_i32 = arith.constant 0 : i32
    return %arg0, %arg2 : i32, i32
  }
  func.func @transform_1(%arg0: i32, %arg1: i32, %arg2: i32) -> (i32, i32) {
    %c0_i32 = arith.constant 0 : i32
    return %arg2, %arg1 : i32, i32
  }
  func.func @transform_2(%arg0: i32, %arg1: i32, %arg2: i32) -> (i32, i32) {
    %c0_i32 = arith.constant 0 : i32
    %c0_i32_0 = arith.constant 0 : i32
    return %c0_i32, %arg1 : i32, i32
  }
  func.func @transform_3(%arg0: i32, %arg1: i32, %arg2: i32) -> (i32, i32) {
    %c0_i32 = arith.constant 0 : i32
    return %arg0, %arg1 : i32, i32
  }
}

</mosaic_0001>

<bundles_post_ra>
// kernel: linear_block_forward.1
= control target key start
LH: loop header
LB: loop body
LE: loop exit
PB: predicated region body
PF: predicated region fallthrough
CT: control target
= control target key end

     0   :  { %v243_v3 = vmov 0.0|0.0   ;;  %vm244_vm0 = vmmov 0   ;;  %v245_v6 = vmov 0.0   ;;  %s333_s0 = inlined_call_operand.vmem [shape: f32[8,128], index: 0, kind: input, shape index: {}]   ;;  %s334_s1 = inlined_call_operand.vmem [shape: f32[128,128], index: 1, kind: input, shape index: {}]   ;;  %s335_s2 = inlined_call_operand.vmem [shape: f32[1,128], index: 2, kind: input, shape index: {}]   ;;  %s336_s3 = inlined_call_operand.hbm [shape: f32[8,128], index: 3, kind: output, shape index: {}]  }
   0x1   :  { %v22_v0 = vld [vmem:[%s334_s1] sm:$0xff]  ;;  %v23_v1 = vld [vmem:[%s334_s1 + $0x8] sm:$0xff]  ;;  %v24_v2 = vld [vmem:[%s334_s1 + $0x10] sm:$0xff]  ;;  %191 = vmatprep.subr.bf16.mxu0 %v243_v3  ;;  %188 = vmatprep.mubr.msk.f32.mxu0 %vm244_vm0, %v245_v6 }
   0x2   :  { %v192_v4 = vpack.c.bf16 %v23_v1, %v22_v0  ;;  %v25_v5 = vld [vmem:[%s334_s1 + $0x18] sm:$0xff]  ;;  %v26_v8 = vld [vmem:[%s334_s1 + $0x20] sm:$0xff]  ;;  %v27_v9 = vld [vmem:[%s334_s1 + $0x28] sm:$0xff] }
   0x3   :  { %v195_v7 = vpack.c.bf16 %v25_v5, %v24_v2 }
   0x4   :  { %193 = vmatpush3.bf16.msra.mxu0 %v192_v4 }
   0x5   :  { %194 = vmatprep.subr.bf16.mxu0 %v243_v3 }
   0x6   :  { %8 = vsyncpa [#allocation3], 0  ;;  %v198_v10 = vpack.c.bf16 %v27_v9, %v26_v8  ;;  %v28_v11 = vld [vmem:[%s334_s1 + $0x30] sm:$0xff]  ;;  %v29_v12 = vld [vmem:[%s334_s1 + $0x38] sm:$0xff]  ;;  %s246_s21 = smov [#allocation2]  }
   0x7   :  { %v201_v13 = vpack.c.bf16 %v29_v12, %v28_v11  ;;  %v30_v14 = vld [vmem:[%s334_s1 + $0x40] sm:$0xff]  ;;  %v31_v15 = vld [vmem:[%s334_s1 + $0x48] sm:$0xff]  ;;  %v32_v17 = vld [vmem:[%s334_s1 + $0x50] sm:$0xff]  ;;  %s130_s22 = sshll.u32 %s246_s21, 4  ;;  %s131_s22 = int_to_ptr.vmem [resolvable:$true] %s130_s22 }
   0x8   :  { %196 = vmatpush3.bf16.msra.mxu0 %v195_v7  ;;  %v204_v16 = vpack.c.bf16 %v31_v15, %v30_v14  ;;  %v33_v18 = vld [vmem:[%s334_s1 + $0x58] sm:$0xff]  ;;  %v34_v20 = vld [vmem:[%s334_s1 + $0x60] sm:$0xff]  ;;  %v35_v21 = vld [vmem:[%s334_s1 + $0x68] sm:$0xff]  ;;  %p224_p1 = scmp.lt.s32.totalorder %s131_s22, %s131_s22 }
   0x9   :  { %197 = vmatprep.subr.bf16.mxu0 %v243_v3  ;;  %v207_v19 = vpack.c.bf16 %v33_v18, %v32_v17  ;;  %v210_v22 = vpack.c.bf16 %v35_v21, %v34_v20  ;;  %v36_v23 = vld [vmem:[%s334_s1 + $0x70] sm:$0xff]  ;;  %v37_v24 = vld [vmem:[%s334_s1 + $0x78] sm:$0xff]  ;;  %v21_v26 = vld [vmem:[%s333_s0] sm:$0xff]  ;;  %s219_s1 = scalar_lea.vmem %s131_s22, 128 }
   0xa   :  { %v213_v25 = vpack.c.bf16 %v37_v24, %v36_v23  ;;  %v138_v28 = vld [vmem:[%s335_s2] ss:$0 sm:$0xff]  ;;  %p220_p0 = scmp.ne.s32.totalorder %s131_s22, %s219_s1  ;;  %p225_p2 = scmp.lt.s32.totalorder %s219_s1, %s219_s1 }
   0xc   :  { %199 = vmatpush3.bf16.msra.mxu0 %v198_v10  ;;  %p226_p3 = por %p225_p2, %p224_p1 }
   0xd   :  { %200 = vmatprep.subr.bf16.mxu0 %v243_v3 }
   0xe   :  { %p227_p4 = pnand %p226_p3, %p220_p0 }
  0x10   :  { %202 = vmatpush3.bf16.msra.mxu0 %v201_v13 }
  0x11   :  { %203 = vmatprep.subr.bf16.mxu0 %v243_v3 }
  0x14   :  { %205 = vmatpush3.bf16.msra.mxu0 %v204_v16 }
  0x15   :  { %206 = vmatprep.subr.bf16.mxu0 %v243_v3 }
  0x18   :  { %208 = vmatpush3.bf16.msra.mxu0 %v207_v19 }
  0x19   :  { %209 = vmatprep.subr.bf16.mxu0 %v243_v3 }
  0x1c   :  { %211 = vmatpush3.bf16.msra.mxu0 %v210_v22 }
  0x1d   :  { %212 = vmatprep.subr.bf16.mxu0 %v243_v3 }
  0x20   :  { %214 = vmatpush3.bf16.msra.mxu0 %v213_v25 }
  0x23   :  { %189 = vmatmul.mubr.f32.vlgmr.msra.gmra.mrb[0].mxu0 %v21_v26 }
  0xf6   :  { %v104_v27 = vpop.f32.mrb[0].mxu0 }
  0xf7   :  { %v190_v29 = vpop.f32.mrb[1].mxu0  ;;  %v121_v30 = vadd.f32 %v138_v28, %v104_v27 }
  0xf9   :  { %v122_v31 = vmax.f32 %v121_v30, 0.0 }
  0xfb   :  { %123 = vst [vmem:[#allocation2] sm:$0xff] %v122_v31 }
  0xfc   :  { %230 = shalt.err (!%p227_p4)
}
  0xfd   :  { %s231_s24 = scalar_lea.hbm %s336_s3, 128 }
  0xfe   :  { %p232_p5 = scmp.ne.s32.totalorder %s336_s3, %s231_s24  ;;  %p235_p6 = scmp.lt.u32.totalorder %s231_s24, %s336_s3 }
 0x100   :  { %p237_p7 = pnand %p235_p6, %p232_p5 }
 0x102   :  { %240 = shalt.err (!%p237_p7)
}
 0x103   :  { %133 = dma.vmem_to_hbm [thread:$0]  %s131_s22, 128, %s336_s3, [#allocation3]  }
 0x104   :  { %241 = dma.done.wait [#allocation3], 128  }
 0x105   :  { %242 = vsyncadd [#allocation3], 4294967168 }
 0x106   :  { %137 = vsyncpa [#allocation3], 1 }

</bundles_post_ra>
